<compile_context>
chip_gen: v6e
topology: v6e:2x2x1
jax: 0.10.0
libtpu: 0.0.40
codegen_flags: <defaults>
</compile_context>

<pallas_src>
from functools import partial

import jax
import jax.numpy as jnp
from jax.experimental import pallas as pl
from jax.experimental.pallas import tpu as pltpu

_LANE = 128
_HW_BLOCK_CAP = 4096          # lanes per tile (~1-4 MiB tiles)
_VMEM_MARGIN = 8 << 20        # Mosaic internal scratch headroom


def _round_up(v, m):
    return ((v + m - 1) // m) * m


def _cdiv(a, b):
    return (a + b - 1) // b


def _padded_param_bytes(C, itemsize):
    # A (C, 1) block pads to (ceil(C/8)*8, 128) elements in VMEM.
    return _round_up(C, 8) * _LANE * itemsize


def _vmem_capacity_bytes():
    # Generation-aware physical VMEM (128 MiB on v5e/v6e, 64 MiB on v7x).
    try:
        cap = getattr(pltpu.get_tpu_info(), "vmem_capacity_bytes", None)
        if cap:
            return int(cap)
    except Exception:
        pass
    return 64 * 1024 * 1024   # conservative (v7x) fallback


# ----------------------------------------------------------------------------
# Single-pass kernel: whole (C, HW) slab per sample, 1R + 1W.
# ----------------------------------------------------------------------------
def _grn_full_kernel(x_ref, g_ref, b_ref, o_ref):
    xf = x_ref[0].astype(jnp.float32)                         # (C, HW)
    sumsq = jnp.sum(xf * xf, axis=-1, keepdims=True)          # (C, 1)
    gx = jnp.sqrt(sumsq)
    nx = gx / (jnp.mean(gx, axis=0, keepdims=True) + 1e-6)    # (C, 1)
    scale = g_ref[...].astype(jnp.float32) * nx + 1.0         # gamma*Nx + 1
    o_ref[0] = (scale * xf + b_ref[...].astype(jnp.float32)).astype(o_ref.dtype)


# ----------------------------------------------------------------------------
# Two-call fallback: (1) reduce -> folded per-channel scale, (2) apply.
# ----------------------------------------------------------------------------
def _grn_reduce_kernel(x_ref, g_ref, scale_ref, sumsq_ref, *, hw, hw_block, ragged):
    t = pl.program_id(1)

    @pl.when(t == 0)
    def _init():
        sumsq_ref[...] = jnp.zeros_like(sumsq_ref)

    xf = x_ref[0].astype(jnp.float32)                         # (C, hw_block)
    xsq = xf * xf
    if ragged:
        # Zero the out-of-bounds tail of the last tile (no jnp.pad needed).
        lane = jax.lax.broadcasted_iota(jnp.int32, xsq.shape, 1)
        xsq = jnp.where((lane + t * hw_block) < hw, xsq, 0.0)
    sumsq_ref[...] += jnp.sum(xsq, axis=-1, keepdims=True)

    @pl.when(t == pl.num_programs(1) - 1)
    def _finalize():
        gx = jnp.sqrt(sumsq_ref[...])                         # (C, 1)
        nx = gx / (jnp.mean(gx, axis=0, keepdims=True) + 1e-6)
        scale_ref[0] = g_ref[...].astype(jnp.float32) * nx + 1.0


def _grn_apply_kernel(x_ref, s_ref, b_ref, o_ref):
    # Out-of-bounds lanes of a ragged last tile read garbage but are never
    # written back (Pallas clamps the partial output-block store).
    xf = x_ref[0].astype(jnp.float32)
    o_ref[0] = (s_ref[0] * xf + b_ref[...].astype(jnp.float32)).astype(o_ref.dtype)


# ----------------------------------------------------------------------------
# Wrapper
# ----------------------------------------------------------------------------
def grn_pallas(x, gamma, beta, *, hw_block=None, donate_x=False):
    """GRN forward. x: (N, C, H, W) NCHW; gamma/beta: (1, C, 1, 1) as in PyTorch."""
    N, C, H, W = x.shape
    HW = H * W
    x_flat = x.reshape(N, C, HW)
    g = gamma.reshape(C, 1)
    b = beta.reshape(C, 1)

    itemsize = jnp.dtype(x.dtype).itemsize
    p_itemsize = jnp.dtype(gamma.dtype).itemsize
    param_bytes = 2 * 2 * _padded_param_bytes(C, p_itemsize)  # 2 params, dbl-buffered

    cap = _vmem_capacity_bytes()
    budget = int(0.75 * cap)
    alias_kwargs = {"input_output_aliases": {0: 0}} if donate_x else {}

    slab = C * HW
    # double-buffered in+out blocks + ~2 slab-sized f32 temporaries (xf, scale*xf)
    single_pass_bytes = 4 * slab * itemsize + 2 * slab * 4 + param_bytes

    if hw_block is None and single_pass_bytes <= budget:
        # ---- single-pass: whole (C, HW) slab per sample (1R + 1W) ----------
        out_flat = pl.pallas_call(
            _grn_full_kernel,
            out_shape=jax.ShapeDtypeStruct((N, C, HW), x.dtype),
            grid_spec=pltpu.PrefetchScalarGridSpec(
                num_scalar_prefetch=0,
                grid=(N,),
                in_specs=[
                    pl.BlockSpec((1, C, HW), lambda n: (n, 0, 0)),
                    pl.BlockSpec((C, 1), lambda n: (0, 0)),
                    pl.BlockSpec((C, 1), lambda n: (0, 0)),
                ],
                out_specs=pl.BlockSpec((1, C, HW), lambda n: (n, 0, 0)),
            ),
            compiler_params=pltpu.CompilerParams(
                dimension_semantics=("parallel",),
                vmem_limit_bytes=int(min(cap, single_pass_bytes + _VMEM_MARGIN)),
            ),
            **alias_kwargs,
        )(x_flat, g, b)
        return out_flat.reshape(N, C, H, W)

    # ---- two-call fallback: reduce (scale) + apply ---------------------------
    if hw_block is None:
        # Conservative per-column cost: in+out double-buffered + two f32 temps.
        bytes_per_col = max(1, C * (4 * itemsize + 8))
        vmem_cols = max(_LANE, (budget - param_bytes) // bytes_per_col)
        hw_block_max = max(_LANE, (min(_HW_BLOCK_CAP, vmem_cols) // _LANE) * _LANE)
        # Balance tiles so tail padding stays < 128 lanes per row.
        hw_block = _round_up(_cdiv(HW, _cdiv(HW, hw_block_max)), _LANE)
    else:
        hw_block = max(_LANE, _round_up(int(hw_block), _LANE))
    hw_block = min(hw_block, _round_up(HW, _LANE))
    n_tiles = _cdiv(HW, hw_block)
    ragged = (HW % hw_block) != 0

    tile_cols = C * hw_block
    reduce_limit = int(min(cap, 2 * tile_cols * itemsize + tile_cols * 4
                           + param_bytes + _VMEM_MARGIN))
    apply_limit = int(min(cap, 4 * tile_cols * itemsize + 2 * tile_cols * 4
                          + param_bytes + _VMEM_MARGIN))

    # Pass 1: per-channel sum of squares -> folded scale = gamma*Nx + 1.
    scale = pl.pallas_call(
        partial(_grn_reduce_kernel, hw=HW, hw_block=hw_block, ragged=ragged),
        out_shape=jax.ShapeDtypeStruct((N, C, 1), jnp.float32),
        grid_spec=pltpu.PrefetchScalarGridSpec(
            num_scalar_prefetch=0,
            grid=(N, n_tiles),
            in_specs=[
                pl.BlockSpec((1, C, hw_block), lambda n, t: (n, 0, t)),
                pl.BlockSpec((C, 1), lambda n, t: (0, 0)),
            ],
            out_specs=pl.BlockSpec((1, C, 1), lambda n, t: (n, 0, 0)),
            scratch_shapes=[pltpu.VMEM((C, 1), jnp.float32)],
        ),
        compiler_params=pltpu.CompilerParams(
            dimension_semantics=("parallel", "arbitrary"),
            vmem_limit_bytes=reduce_limit,
        ),
    )(x_flat, g)

    # Pass 2: y = scale * x + beta, streamed tile-by-tile.
    out_flat = pl.pallas_call(
        _grn_apply_kernel,
        out_shape=jax.ShapeDtypeStruct((N, C, HW), x.dtype),
        grid_spec=pltpu.PrefetchScalarGridSpec(
            num_scalar_prefetch=0,
            grid=(N, n_tiles),
            in_specs=[
                pl.BlockSpec((1, C, hw_block), lambda n, t: (n, 0, t)),
                pl.BlockSpec((1, C, 1), lambda n, t: (n, 0, 0)),
                pl.BlockSpec((C, 1), lambda n, t: (0, 0)),
            ],
            out_specs=pl.BlockSpec((1, C, hw_block), lambda n, t: (n, 0, t)),
        ),
        compiler_params=pltpu.CompilerParams(
            dimension_semantics=("parallel", "parallel"),
            vmem_limit_bytes=apply_limit,
        ),
        **alias_kwargs,
    )(x_flat, scale, b)

    return out_flat.reshape(N, C, H, W)


def grn_reference(x, gamma, beta):
    # Pure-JAX reference mirroring the PyTorch forward.
    xf = x.astype(jnp.float32)
    gx = jnp.sqrt(jnp.sum(xf * xf, axis=(2, 3), keepdims=True))
    nx = gx / (jnp.mean(gx, axis=1, keepdims=True) + 1e-6)
    return gamma * (xf * nx) + beta + xf


if __name__ == "__main__":
    N, C, H, W = 2, 4, 16, 16
    key = jax.random.PRNGKey(0)
    kx, kg, kb = jax.random.split(key, 3)

    x = jax.random.normal(kx, (N, C, H, W), dtype=jnp.float32)
    # Module __init__ zeros gamma/beta; use small random values so the hot
    # path is actually exercised (zeros would reduce to identity + beta).
    gamma = jax.random.normal(kg, (1, C, 1, 1), dtype=jnp.float32) * 0.1
    beta = jax.random.normal(kb, (1, C, 1, 1), dtype=jnp.float32) * 0.1

    # 1) f32, single-pass path (whole (C, HW) slab per sample).
    out = jax.block_until_ready(grn_pallas(x, gamma, beta))
    ref = grn_reference(x, gamma, beta)
    assert out.shape == (N, C, H, W)
    assert jnp.allclose(out, ref, atol=1e-5, rtol=1e-5), "f32 single-pass mismatch"

    # 2) f32, forced two-call fallback with HW % hw_block == 0 (2 tiles).
    out_t = jax.block_until_ready(grn_pallas(x, gamma, beta, hw_block=128))
    assert jnp.allclose(out_t, ref, atol=1e-5, rtol=1e-5), "f32 tiled mismatch"

    # 3) fallback with a ragged last tile across multiple tiles (18x18 -> 324).
    x3 = jax.random.normal(kx, (N, C, 18, 18), dtype=jnp.float32)
    out3 = jax.block_until_ready(grn_pallas(x3, gamma, beta, hw_block=128))
    ref3 = grn_reference(x3, gamma, beta)
    assert jnp.allclose(out3, ref3, atol=1e-5, rtol=1e-5), "ragged multi-tile mismatch"

    # 4) fallback with HW smaller than one lane-tile (10x10 -> 100, 1 ragged tile).
    x4 = jax.random.normal(kx, (N, C, 10, 10), dtype=jnp.float32)
    out4 = jax.block_until_ready(grn_pallas(x4, gamma, beta, hw_block=128))
    ref4 = grn_reference(x4, gamma, beta)
    assert jnp.allclose(out4, ref4, atol=1e-5, rtol=1e-5), "small ragged tile mismatch"

    # 5) bf16 I/O (half the HBM traffic); internal accumulation stays f32.
    x_bf = x.astype(jnp.bfloat16)
    out_bf = jax.block_until_ready(grn_pallas(x_bf, gamma, beta))
    ref_bf = grn_reference(x_bf.astype(jnp.float32), gamma, beta)
    assert out_bf.dtype == jnp.bfloat16
    assert jnp.allclose(out_bf.astype(jnp.float32), ref_bf, atol=3e-2, rtol=3e-2), \
        "bf16 single-pass mismatch"

    # 6) bf16 through the ragged fallback path.
    x3_bf = x3.astype(jnp.bfloat16)
    out3_bf = jax.block_until_ready(grn_pallas(x3_bf, gamma, beta, hw_block=128))
    ref3_bf = grn_reference(x3_bf.astype(jnp.float32), gamma, beta)
    assert jnp.allclose(out3_bf.astype(jnp.float32), ref3_bf, atol=3e-2, rtol=3e-2), \
        "bf16 tiled mismatch"

    print("KERNEL_OK")
</pallas_src>

<mosaic_0001>
module attributes {stable_mosaic.version = 11 : i64} {
  func.func @_grn_full_kernel(%arg0: i32, %arg1: memref<1x4x256xf32, #tpu.memory_space<vmem>>, %arg2: memref<4x1xf32, #tpu.memory_space<vmem>>, %arg3: memref<4x1xf32, #tpu.memory_space<vmem>>, %arg4: memref<1x4x256xf32, #tpu.memory_space<vmem>>) attributes {dimension_semantics = [#tpu.dimension_semantics<parallel>], iteration_bounds = array<i64: 2>, scalar_prefetch = 0 : i64, scratch_operands = 0 : i64, tpu.core_type = #tpu.core_type<tc>, window_params = [{transform_indices = @transform_0, window_bounds = array<i64: 1, 4, 256>}, {pipeline_mode = #tpu.pipeline_mode<synchronous>, transform_indices = @transform_1, window_bounds = array<i64: 4, 1>}, {pipeline_mode = #tpu.pipeline_mode<synchronous>, transform_indices = @transform_2, window_bounds = array<i64: 4, 1>}, {transform_indices = @transform_3, window_bounds = array<i64: 1, 4, 256>}]} {
    %c0 = arith.constant 0 : index
    %c0_0 = arith.constant 0 : index
    %c0_1 = arith.constant 0 : index
    %0 = vector.load %arg1[%c0, %c0_0, %c0_1] : memref<1x4x256xf32, #tpu.memory_space<vmem>>, vector<1x4x256xf32>
    %1 = vector.shape_cast %0 : vector<1x4x256xf32> to vector<4x256xf32>
    %2 = arith.mulf %1, %1 : vector<4x256xf32>
    %cst = arith.constant dense<0.000000e+00> : vector<4xf32>
    %3 = vector.multi_reduction <add>, %2, %cst [1] : vector<4x256xf32> to vector<4xf32>
    %4 = vector.shape_cast %3 : vector<4xf32> to vector<4x1xf32>
    %5 = math.sqrt %4 : vector<4x1xf32>
    %cst_2 = arith.constant dense<0.000000e+00> : vector<1xf32>
    %6 = vector.multi_reduction <add>, %5, %cst_2 [0] : vector<4x1xf32> to vector<1xf32>
    %7 = vector.shape_cast %6 : vector<1xf32> to vector<1x1xf32>
    %cst_3 = arith.constant 4.000000e+00 : f32
    %8 = vector.broadcast %cst_3 : f32 to vector<1x1xf32>
    %9 = arith.divf %7, %8 : vector<1x1xf32>
    %cst_4 = arith.constant 9.99999997E-7 : f32
    %10 = vector.broadcast %cst_4 : f32 to vector<1x1xf32>
    %11 = arith.addf %9, %10 : vector<1x1xf32>
    %12 = vector.broadcast %11 : vector<1x1xf32> to vector<4x1xf32>
    %13 = arith.divf %5, %12 : vector<4x1xf32>
    %c0_5 = arith.constant 0 : index
    %c0_6 = arith.constant 0 : index
    %14 = vector.load %arg2[%c0_5, %c0_6] : memref<4x1xf32, #tpu.memory_space<vmem>>, vector<4x1xf32>
    %15 = arith.mulf %14, %13 : vector<4x1xf32>
    %cst_7 = arith.constant 1.000000e+00 : f32
    %16 = vector.broadcast %cst_7 : f32 to vector<4x1xf32>
    %17 = arith.addf %15, %16 : vector<4x1xf32>
    %18 = vector.broadcast %17 : vector<4x1xf32> to vector<4x256xf32>
    %19 = arith.mulf %18, %1 : vector<4x256xf32>
    %c0_8 = arith.constant 0 : index
    %c0_9 = arith.constant 0 : index
    %20 = vector.load %arg3[%c0_8, %c0_9] : memref<4x1xf32, #tpu.memory_space<vmem>>, vector<4x1xf32>
    %21 = vector.broadcast %20 : vector<4x1xf32> to vector<4x256xf32>
    %22 = arith.addf %19, %21 : vector<4x256xf32>
    %c0_10 = arith.constant 0 : index
    %c0_11 = arith.constant 0 : index
    %c0_12 = arith.constant 0 : index
    %23 = vector.load %arg4[%c0_10, %c0_11, %c0_12] : memref<1x4x256xf32, #tpu.memory_space<vmem>>, vector<1x4x256xf32>
    %24 = vector.shape_cast %23 : vector<1x4x256xf32> to vector<4x256xf32>
    %25 = vector.shape_cast %22 : vector<4x256xf32> to vector<1x4x256xf32>
    tpu.vector_store %arg4[%c0_10, %c0_11, %c0_12], %25 {strides = array<i32>} : memref<1x4x256xf32, #tpu.memory_space<vmem>>, vector<1x4x256xf32>,
    return
  }
  func.func @transform_0(%arg0: i32) -> (i32, i32, i32) {
    %c0_i32 = arith.constant 0 : i32
    %c0_i32_0 = arith.constant 0 : i32
    %c0_i32_1 = arith.constant 0 : i32
    return %arg0, %c0_i32, %c0_i32_0 : i32, i32, i32
  }
  func.func @transform_1(%arg0: i32) -> (i32, i32) {
    %c0_i32 = arith.constant 0 : i32
    %c0_i32_0 = arith.constant 0 : i32
    %c0_i32_1 = arith.constant 0 : i32
    return %c0_i32, %c0_i32_0 : i32, i32
  }
  func.func @transform_2(%arg0: i32) -> (i32, i32) {
    %c0_i32 = arith.constant 0 : i32
    %c0_i32_0 = arith.constant 0 : i32
    %c0_i32_1 = arith.constant 0 : i32
    return %c0_i32, %c0_i32_0 : i32, i32
  }
  func.func @transform_3(%arg0: i32) -> (i32, i32, i32) {
    %c0_i32 = arith.constant 0 : i32
    %c0_i32_0 = arith.constant 0 : i32
    %c0_i32_1 = arith.constant 0 : i32
    return %arg0, %c0_i32, %c0_i32_0 : i32, i32, i32
  }
}

</mosaic_0001>

<bundles_post_ra>
// kernel: tpu_custom_call.1
= control target key start
LH: loop header
LB: loop body
LE: loop exit
PB: predicated region body
PF: predicated region fallthrough
CT: control target
= control target key end

     0   :  { %8 = vsyncpa [#allocation3], 0  ;;  %s669_s0 = inlined_call_operand.hbm [shape: f32[2,4,256], index: 0, kind: input, shape index: {}]   ;;  %s670_s1 = inlined_call_operand.vmem [shape: f32[4,1], index: 1, kind: input, shape index: {}]   ;;  %s671_s2 = inlined_call_operand.vmem [shape: f32[4,1], index: 2, kind: input, shape index: {}]   ;;  %s672_s3 = inlined_call_operand.hbm [shape: f32[2,4,256], index: 3, kind: output, shape index: {}]  }
   0x1   :  { %10 = vsyncpa [#allocation3 + $0x1], 0 }
   0x2   :  { %11 = vsyncpa [#allocation4], 0 }
   0x3   :  { %13 = vsyncpa [#allocation4 + $0x1], 0  ;;  %s515_s12 = smov 0   ;;  %s517_s13 = smov 0  }
   0x4   :  { %s519_s14 = smov 0   ;;  %s521_s15 = smov 0  }
   0x5 LB: > { %s536_s16 = sadd.s32 4294967295, %s490_s15   ;;  %s328_s17 = sadd.s32 4294967294, %s490_s15   ;;  %s490_s15 = sphi %s521_s15, %s689_s15   ;;  %s486_s14 = sphi %s519_s14, %s688_s14   ;;  %s482_s13 = sphi %s517_s13, %s687_s13   ;;  %s478_s12 = sphi %s515_s12, %s686_s12  }
   0x6   : > { %s540_s18 = sadd.s32 1, %s490_s15   ;;  %s26_s19 = sadd.s32 1, %s486_s14 }
   0x7   : > { %s23_s20 = ssub.s32 %s490_s15, %s540_s18  ;;  %p33_p0 = scmp.ne.s32.totalorder %s486_s14, %s482_s13 }
   0x8   : > { %p24_p1 = scmp.eq.s32.totalorder %s23_s20, 0  ;;  %p34_p2 = scmp.eq.s32.totalorder %s490_s15, 0 }
   0x9   : > { %p39_p3 = scmp.ne.s32.totalorder %s482_s13, %s478_s12  ;;  %p40_p4 = scmp.eq.s32.totalorder %s536_s16, 0 }
   0xa   : > { %s552_s21 = scalar_select %p24_p1, %s486_s14, %s26_s19  }
   0xb   : > { %p554_p5 = por %p34_p2, %p33_p0  ;;  %p558_p6 = por %p40_p4, %p39_p3 }
   0xc   : > { %p105_p7 = scmp.eq.s32.totalorder %s536_s16, 1  ;;  %p111_p8 = scmp.eq.s32.totalorder %s328_s17, 1 }
   0xd   : > { %s676_s23 = scalar_select %p558_p6, 1, 0 }
   0xe   : > { %p356_p10 = scmp.lt.s32.totalorder %s490_s15, 2  ;;  %p565_p11 = por %p105_p7, %p33_p0 }
   0xf   : > { %p569_p12 = por %p111_p8, %p39_p3  ;;  %s137_s26 = sand.u32 1, %s486_s14  }
  0x10   : > { %s677_s24 = scalar_select %p565_p11, 1, 0 }
  0x11   : > { %s678_s25 = scalar_select %p569_p12, 1, 0 }
  0x12   : > { %s342_s27 = sshll.u32 %s490_s15, 7  ;;  %s331_s28 = sshll.u32 %s137_s26, 3 }
  0x13   : > { %s578_s4 = scalar_lea.hbm %s669_s0, %s342_s27  ;;  %s141_s5 = scalar_lea.vmem [#allocation2], %s331_s28 }
  0x14   : > { %s149_s6 = sshll.u32 %s141_s5, 4  ;;  %p582_p13 = pnand %p356_p10, %p554_p5  ;;  %s586_s6 = int_to_ptr.vmem [resolvable:$true] %s149_s6 }
  0x15   : > { %s138_s8 = scalar_lea.sflag [#allocation3], %s137_s26  ;;  %s398_s9 = scalar_lea.hbm %s578_s4, 128 }
  0x16   : > { %p399_p2 = scmp.ne.s32.totalorder %s578_s4, %s398_s9  ;;  %p400_p3 = pneg %p582_p13 }
  0x17   : > { %s403_s17 = scalar_lea.hbm %s669_s0, 256  ;;  %p404_p5 = scmp.lt.s32.totalorder %s578_s4, %s669_s0 }
  0x18   : > { %p401_p4 = pnand %p400_p3, %p399_p2  ;;  %p405_p8 = scmp.lt.s32.totalorder %s403_s17, %s398_s9 }
  0x1a   : > { %p402_p7 = pneg %p401_p4  ;;  %p406_p10 = por %p405_p8, %p404_p5 }
  0x1c   : > { %p407_p9 = pnand %p406_p10, %p402_p7 }
  0x1e   : > { %410 = shalt.err (!%p407_p9)
}
  0x1f   : > { %s411_s22 = scalar_lea.vmem %s586_s6, 128  ;;  %s492_s26 = smov [#allocation2]  }
  0x20   : > { %p412_p0 = scmp.ne.s32.totalorder %s586_s6, %s411_s22  ;;  %s416_s27 = sshll.u32 %s492_s26, 4  ;;  %s417_s27 = int_to_ptr.vmem [resolvable:$false] %s416_s27 }
  0x21   : > { %s418_s28 = scalar_lea.vmem %s417_s27, 256  ;;  %p419_p4 = scmp.lt.s32.totalorder %s586_s6, %s417_s27 }
  0x22   : > { %p414_p1 = pnand %p412_p0, %p400_p3  ;;  %p420_p12 = scmp.lt.s32.totalorder %s418_s28, %s411_s22 }
  0x24   : > { %p415_p2 = pneg %p414_p1  ;;  %p421_p11 = por %p420_p12, %p419_p4 }
  0x26   : > { %p422_p6 = pnand %p421_p11, %p415_p2 }
  0x28   : > { %425 = shalt.err (!%p422_p6)
}
  0x29   : > { %351 = dma.hbm_to_vmem [thread:$0]  (!%p582_p13), %s578_s4, 128, %s586_s6, %s138_s8  }
  0x2a   : > { %p680_p9 = scmp.lt.s32.totalorder %s490_s15, 3  ;;  %p681_p7 = scmp.ge.s32.totalorder %s490_s15, 1 }
  0x2c   : > { %p155_p0 = pnand %p681_p7, %p680_p9 }
  0x2d   : > { %s613_s29 = sand.u32 (!%p155_p0), 1, %s482_s13   ;;  %p682_p6 = scmp.ne.s32.totalorder (!%p155_p0), %s676_s23, 0 }
  0x2e   : > { %158 = sbr.rel (%p155_p0) target bundleno = 396 (0x18c), region = 32  ;;  %s335_s30 = sshll.u32 (!%p155_p0), %s613_s29, 3 }
  0x2f   : > { %s161_s5 = scalar_lea.sflag (!%p155_p0), [#allocation3], %s613_s29  ;;  %s164_s7 = scalar_lea.vmem (!%p155_p0), [#allocation2], %s335_s30 }
  0x33   : > { %469 = dma.done.wait (%p682_p6), %s161_s5, 128  }
  0x34   : > { %471 = vsyncadd (%p682_p6), %s161_s5, 4294967168  ;;  %v187_v0 = vld [vmem:[%s164_s7] sm:$0xff]  ;;  %vm192_vm0 = vcmask 1043456   ;;  %v493_v6 = vmov 0   ;;  %s343_s9 = sshll.u32 %s536_s16, 7  ;;  %s186_s10 = scalar_lea.vmem [#allocation5], %s335_s30 }
  0x35   : > { %v188_v1 = vmul.f32 %v187_v0, %v187_v0  ;;  %391 = vset.pattern.permute.xlu0 %v493_v6  ;;  %392 = vset.pattern.permute.xlu1 %v493_v6  ;;  %v230_v7 = vld [vmem:[%s671_s2] sm:$0xf]  ;;  %v226_v28 = vcombine.high %v187_v0, %v187_v0  ;;  %s258_s11 = sshll.u32 %s186_s10, 4  ;;  %s256_s20 = scalar_lea.hbm %s672_s3, %s343_s9  ;;  %s259_s11 = int_to_ptr.vmem [resolvable:$true] %s258_s11 }
  0x36   : > { %233 = vperm.xlu1 %392, %v230_v7   ;;  %v217_v24 = vld [vmem:[%s670_s1] sm:$0xf]  ;;  %s244_s22 = scalar_lea.sflag [#allocation4], %s613_s29  ;;  %s426_s26 = scalar_lea.vmem %s259_s11, 128 }
  0x37   : > { %v190_v2 = vcombine.high %v188_v1, %v188_v1  ;;  %v193_v3 = vsel %vm192_vm0, %v188_v1, 0.0  ;;  %p427_p11 = scmp.ne.s32.totalorder %s259_s11, %s426_s26  ;;  %p683_p12 = scmp.ne.s32.totalorder %s677_s24, 0 }
  0x38   : > { %s494_s27 = smov [#allocation5]  }
  0x39   : > { %v194_v4 = vsel %vm192_vm0, %v190_v2, 0.0  ;;  %p428_p13 = pnand %p427_p11, %p683_p12  ;;  %s430_s16 = sshll.u32 %s494_s27, 4  ;;  %s431_s16 = int_to_ptr.vmem [resolvable:$false] %s430_s16 }
  0x3a   : > { %v195_v5 = vadd.f32 %v194_v4, %v193_v3  ;;  %s432_s28 = scalar_lea.vmem %s431_s16, 256  ;;  %p433_p3 = scmp.lt.s32.totalorder %s259_s11, %s431_s16 }
  0x3b   : > { %p429_p1 = pneg %p428_p13  ;;  %p434_p5 = scmp.lt.s32.totalorder %s432_s28, %s426_s26 }
  0x3c   : > { %196 = vadd.xlane.f32.xlu0 %v195_v5 }
  0x3d   : > { %p435_p8 = por %p434_p5, %p433_p3 }
  0x3f   : > { %p436_p10 = pnand %p435_p8, %p429_p1 }
  0xb1   : > { %v234_v30 = vpop.permute.xlu1 %233 }
  0xc5   : > { %v197_v8 = vpop.xlane.xlu0 %196 }
  0xc6   : > { %394 = vrsqrt.f32 %v197_v8  ;;  %vm200_vm1 = vcmp.eq.f32.partialorder %v197_v8, inf  ;;  %v203_v11 = vand.u32 2147483648, %v197_v8  ;;  %vm202_vm2 = vcmp.eq.f32.partialorder %v197_v8, 0.0 }
  0xd3   : > { %v395_v9 = vpop.eup %394 }
  0xd4   : > { %v199_v10 = vmul.f32 %v395_v9, %v197_v8 }
  0xd6   : > { %v201_v12 = vsel %vm200_vm1, %v197_v8, %v199_v10 }
  0xd7   : > { %v204_v13 = vsel %vm202_vm2, %v203_v11, %v201_v12 }
  0xd8   : > { %v205_v14 = vsel %vm192_vm0, %v204_v13, 0.0 }
  0xd9   : > { %v206_v15 = vrot.slane %v205_v14, 4 }
  0xdb   : > { %v207_v16 = vadd.f32 %v206_v15, %v205_v14 }
  0xdd   : > { %v208_v17 = vrot.slane %v207_v16, 2 }
  0xdf   : > { %v209_v18 = vadd.f32 %v208_v17, %v207_v16 }
  0xe1   : > { %v210_v19 = vrot.slane %v209_v18, 1 }
  0xe3   : > { %v211_v20 = vadd.f32 %v210_v19, %v209_v18 }
  0xe5   : > { %v213_v21 = vmul.f32 0.25, %v211_v20 }
  0xe7   : > { %v214_v22 = vadd.f32 1e-06, %v213_v21 }
  0xe9   : > { %396 = vrcp.f32 %v214_v22 }
  0xf6   : > { %v397_v23 = vpop.eup %396 }
  0xf7   : > { %v216_v25 = vmul.f32 %v397_v23, %v204_v13 }
  0xf9   : > { %v218_v26 = vmul.f32 %v217_v24, %v216_v25 }
  0xfb   : > { %v219_v27 = vadd.f32 1.0, %v218_v26 }
  0xfd   : > { %222 = vperm.xlu0 %391, %v219_v27  }
 0x178   : > { %v223_v29 = vpop.permute.xlu0 %222 }
 0x179   : > { %v228_v31 = vmul.f32 %v223_v29, %v187_v0  ;;  %v229_v32 = vmul.f32 %v226_v28, %v223_v29 }
 0x17b   : > { %v236_v33 = vadd.f32 %v234_v30, %v228_v31  ;;  %v237_v34 = vadd.f32 %v234_v30, %v229_v32 }
 0x17d   : > { %v240_v35 = vcombine.low %v236_v33, %v237_v34 }
 0x17f   : > { %242 = vst [vmem:[%s186_s10] sm:$0xff] %v240_v35 }
 0x180   : > { %439 = shalt.err (!%p436_p10)
}
 0x181   : > { %s440_s30 = scalar_lea.hbm %s256_s20, 128  ;;  %s444_s7 = scalar_lea.hbm %s672_s3, 256 }
 0x182   : > { %p441_p2 = scmp.ne.s32.totalorder %s256_s20, %s440_s30  ;;  %p445_p7 = scmp.lt.s32.totalorder %s256_s20, %s672_s3 }
 0x183   : > { %p446_p0 = scmp.lt.s32.totalorder %s444_s7, %s440_s30 }
 0x184   : > { %p442_p4 = pnand %p441_p2, %p683_p12 }
 0x185   : > { %p447_p6 = por %p446_p0, %p445_p7 }
 0x186   : > { %p443_p9 = pneg %p442_p4 }
 0x188   : > { %p448_p11 = pnand %p447_p6, %p443_p9 }
 0x18a   : > { %451 = shalt.err (!%p448_p11)
}
 0x18b   : > { %346 = dma.vmem_to_hbm [thread:$0]  (%p683_p12), %s259_s11, 128, %s256_s20, %s244_s22  }
 0x18c PF: > { %s270_s23 = sand.u32 1, %s478_s12   ;;  %p684_p13 = scmp.ne.s32.totalorder %s678_s25, 0 }
 0x18d   : > { %p685_p1 = scmp.ge.s32.totalorder %s490_s15, 2  ;;  %s271_s8 = scalar_lea.sflag [#allocation4], %s270_s23 }
 0x18f   : > { %p353_p3 = pnand %p685_p1, %p684_p13 }
 0x191   : > { %p354_p5 = pneg %p353_p3 }
 0x193   : > { %473 = dma.done.wait (%p354_p5), %s271_s8, 128  }
 0x194   : > { %475 = vsyncadd (%p354_p5), %s271_s8, 4294967168  ;;  %p16_p8 = scmp.ge.s32.totalorder %s540_s18, 4   ;;  %s686_s12 = smov %s482_s13 }
 0x195   : > { %s687_s13 = smov %s486_s14  ;;  %s688_s14 = smov %s552_s21 }
 0x196   : > { %s689_s15 = smov %s540_s18  ;;  %18 = sbr.rel (!%p16_p8) target bundleno = 5 (0x5), region = 77 }
 0x19b   :  { %276 = vsyncpa [#allocation3], 1 }
 0x19c   :  { %278 = vsyncpa [#allocation3 + $0x1], 1 }
 0x19d   :  { %279 = vsyncpa [#allocation4], 1 }
 0x19e   :  { %281 = vsyncpa [#allocation4 + $0x1], 1 }

</bundles_post_ra>
